<compile_context>
chip_gen: v5e
topology: v5e:2x2
jax: 0.10.0
libtpu: 0.0.40
codegen_flags: <defaults>
</compile_context>

<pallas_src>
import functools

import jax
import jax.numpy as jnp
from jax.experimental import pallas as pl
from jax.experimental.pallas import tpu as pltpu


# ----------------------------- kernels ------------------------------------- #

def _mean_kernel(x_ref, o_ref, *, inv_cd):
    # x_ref block: (bt, C*D, hw_t);  o_ref block: (bt, 1, hw_t)
    s = jnp.sum(x_ref[...].astype(jnp.float32), axis=1, keepdims=True)
    o_ref[...] = (s * inv_cd).astype(o_ref.dtype)


def _mean_kernel_split(x_ref, o_ref, acc_ref, *, inv_cd):
    # Reduction split over the last ("arbitrary") grid axis: accumulate partial
    # sums in an f32 VMEM scratch, finalize on the last reduction step.
    k = pl.program_id(2)

    @pl.when(k == 0)
    def _():
        acc_ref[...] = jnp.zeros_like(acc_ref)

    acc_ref[...] += jnp.sum(x_ref[...].astype(jnp.float32), axis=1, keepdims=True)

    @pl.when(k == pl.num_programs(2) - 1)
    def _():
        o_ref[...] = (acc_ref[...] * inv_cd).astype(o_ref.dtype)


# ------------------------- tiling / budget logic ---------------------------- #

def _divisors(x):
    ds = []
    i = 1
    while i * i <= x:
        if x % i == 0:
            ds.append(i)
            j = x // i
            if j != i:
                ds.append(j)
        i += 1
    return sorted(ds)


def _tpu_generation():
    """Best-effort TPU generation (4/5/6/7) from the device kind string."""
    try:
        kind = jax.devices()[0].device_kind.lower()
    except Exception:
        return None
    for gen in (7, 6, 5, 4):
        if (f"v{gen}" in kind) or (f"tpu{gen}" in kind) or (f"tpu {gen}" in kind):
            return gen
    return None


def _vmem_budget():
    """Returns (per-input-buffer block budget, base vmem limit, vmem cap) bytes."""
    gen = _tpu_generation()
    mib = 1024 * 1024
    if gen is not None and gen >= 7:
        # v7x: 64 MiB physical VMEM, 3.2 TB/s HBM -> larger blocks amortize the
        # ~0.35us/step overhead; cap the scoped limit well below physical.
        return 12 * mib, 48 * mib, 56 * mib
    if gen == 6:
        # v6e: 128 MiB physical VMEM / 32 MiB scoped default.
        return 12 * mib, 64 * mib, 100 * mib
    # v5e (16 MiB scoped default) and unknown generations: conservative blocks,
    # but still raise the scoped limit explicitly.
    return 6 * mib, 32 * mib, 100 * mib


def _choose_tiles(n, cd, hw, itemsize, budget, min_parallel_steps=2):
    """Pick (bt, rk, hw_t): batch rows, reduction rows, lane columns per block.

    Constraints:
      * rk divides cd and rk % (32 // itemsize) == 0, or rk == cd
      * hw_t divides hw and hw_t % 128 == 0, or hw_t == hw
      * bt divides n
    Preference: whole reduction in one block if it fits, then largest block,
    then >= min_parallel_steps blocks on the parallel (batch x lane) axes.
    """
    align = max(1, 32 // itemsize)  # 8 for f32, 16 for bf16/f16, 32 for i8/fp8

    rk_opts = [v for v in _divisors(cd) if v % align == 0]
    if cd not in rk_opts:
        rk_opts.append(cd)          # full reduction axis is always legal
    rk_opts.sort(reverse=True)

    hw_opts = [v for v in _divisors(hw) if v % 128 == 0]
    if hw not in hw_opts:
        hw_opts.append(hw)          # full lane axis is always legal
    hw_opts.sort(reverse=True)

    bt_opts = sorted(_divisors(n), reverse=True)
    hw_min = hw_opts[-1]

    # Largest reduction tile whose minimal (1, rk, hw_min) slab fits the budget.
    rk = rk_opts[-1]                # fallback: smallest aligned tile (caller
    for cand in rk_opts:            # raises vmem_limit_bytes if it overflows).
        if cand * hw_min * itemsize <= budget:
            rk = cand
            break

    # Largest lane tile that fits with that rk.
    hw_t = hw_opts[-1]
    for cand in hw_opts:
        if rk * cand * itemsize <= budget:
            hw_t = cand
            break

    # Largest batch packing that fits.
    bt = 1
    for cand in bt_opts:
        if cand * rk * hw_t * itemsize <= budget:
            bt = cand
            break

    # Guarantee >= min_parallel_steps grid steps on the parallel axes
    # (lets v7x shard across its 2 TensorCores; ~free on v5e/v6e).
    bt_idx = bt_opts.index(bt)
    hw_idx = hw_opts.index(hw_t)
    while (n // bt_opts[bt_idx]) * (hw // hw_opts[hw_idx]) < min_parallel_steps:
        if bt_idx + 1 < len(bt_opts):
            bt_idx += 1
        elif hw_idx + 1 < len(hw_opts):
            hw_idx += 1
        else:
            break
    return bt_opts[bt_idx], rk, hw_opts[hw_idx]


# ------------------------------ forward ------------------------------------- #

def encoder_forward(x, block_budget_bytes=None):
    """Pallas equivalent of Encoder.forward: mean over dims (1, 2), keepdim."""
    n, c, d, h, w = x.shape
    cd, hw = c * d, h * w
    itemsize = jnp.dtype(x.dtype).itemsize
    inv_cd = 1.0 / float(cd)

    budget, vmem_base, vmem_cap = _vmem_budget()
    if block_budget_bytes is not None:
        budget = int(block_budget_bytes)
    bt, rk, hw_t = _choose_tiles(n, cd, hw, itemsize, budget)

    # Lane-dense layout: collapse (C, D) -> reduction axis, (H, W) -> lanes.
    x3 = x.reshape(n, cd, hw)
    out_shape = jax.ShapeDtypeStruct((n, 1, hw), x.dtype)

    # Explicit scoped-VMEM request: double-buffered input + output + accumulator
    # plus margin; raised above the base if the fallback block is oversized.
    in_block_bytes = bt * rk * hw_t * itemsize
    out_block_bytes = bt * hw_t * itemsize
    acc_bytes = bt * hw_t * 4
    needed = 2 * in_block_bytes + 2 * out_block_bytes + acc_bytes + (2 << 20)
    vmem_limit = int(min(vmem_cap, max(vmem_base, needed)))

    if rk == cd:
        # Whole reduction in one block: no accumulator, 2-D parallel grid.
        grid = (n // bt, hw // hw_t)
        out3 = pl.pallas_call(
            functools.partial(_mean_kernel, inv_cd=inv_cd),
            out_shape=out_shape,
            grid=grid,
            in_specs=[pl.BlockSpec((bt, cd, hw_t), lambda i, j: (i, 0, j))],
            out_specs=pl.BlockSpec((bt, 1, hw_t), lambda i, j: (i, 0, j)),
            compiler_params=pltpu.CompilerParams(
                dimension_semantics=("parallel", "parallel"),
                vmem_limit_bytes=vmem_limit),
        )(x3)
    else:
        # Reduction split over a trailing "arbitrary" axis, f32 VMEM accumulator.
        grid = (n // bt, hw // hw_t, cd // rk)
        out3 = pl.pallas_call(
            functools.partial(_mean_kernel_split, inv_cd=inv_cd),
            out_shape=out_shape,
            grid=grid,
            in_specs=[pl.BlockSpec((bt, rk, hw_t), lambda i, j, k: (i, k, j))],
            out_specs=pl.BlockSpec((bt, 1, hw_t), lambda i, j, k: (i, 0, j)),
            scratch_shapes=[pltpu.VMEM((bt, 1, hw_t), jnp.float32)],
            compiler_params=pltpu.CompilerParams(
                dimension_semantics=("parallel", "parallel", "arbitrary"),
                vmem_limit_bytes=vmem_limit),
        )(x3)

    # Restore torch.mean(x, dim=(1, 2), keepdim=True) output shape.
    return out3.reshape(n, 1, 1, h, w)


def init_encoder_params(key, frame_stack):
    """Deterministic init of the Conv3d parameters declared in Encoder.__init__.
    They are never used by forward(), so they exist only for shape fidelity."""
    k1, k2, k3, k4 = jax.random.split(key, 4)
    return {
        # conv_layer1: Conv3d(frame_stack, 32, kernel=(3,3,3), padding=1)
        "conv1_w": jax.random.normal(k1, (32, frame_stack, 3, 3, 3), jnp.float32) * 0.02,
        "conv1_b": jax.random.normal(k2, (32,), jnp.float32) * 0.02,
        # conv_layer2: Conv3d(32, 1, kernel=(3,3,3), padding=1)
        "conv2_w": jax.random.normal(k3, (1, 32, 3, 3, 3), jnp.float32) * 0.02,
        "conv2_b": jax.random.normal(k4, (1,), jnp.float32) * 0.02,
    }


if __name__ == "__main__":
    key = jax.random.PRNGKey(0)
    kx, kp = jax.random.split(key)

    # Small NCDHW shapes consistent with a Conv3d encoder input:
    # batch=2, frame_stack=4, depth=8, H=16, W=16  (H*W=256 -> lane-dense).
    N, C, D, H, W = 2, 4, 8, 16, 16
    x = jax.random.normal(kx, (N, C, D, H, W), jnp.float32)

    # Parameters mirror __init__ only; forward() never touches them.
    _params = init_encoder_params(kp, frame_stack=C)

    ref = jnp.mean(x, axis=(1, 2), keepdims=True)

    # 1) Default (generation-aware budget) path: single-block reduction.
    out = jax.block_until_ready(encoder_forward(x))
    assert out.shape == (N, 1, 1, H, W), out.shape
    assert jnp.allclose(out, ref, atol=1e-6, rtol=1e-6)

    # 2) Tiny artificial budget to exercise the split-reduction (accumulator)
    #    path and the hw/batch tiling on the same data.
    out_split = jax.block_until_ready(encoder_forward(x, block_budget_bytes=8 * 1024))
    assert out_split.shape == (N, 1, 1, H, W), out_split.shape
    assert jnp.allclose(out_split, ref, atol=1e-6, rtol=1e-6)

    print("KERNEL_OK")
</pallas_src>

<mosaic_0001>
module attributes {stable_mosaic.version = 11 : i64} {
  func.func @_mean_kernel(%arg0: i32, %arg1: i32, %arg2: memref<1x32x256xf32, #tpu.memory_space<vmem>>, %arg3: memref<1x1x256xf32, #tpu.memory_space<vmem>>) attributes {dimension_semantics = [#tpu.dimension_semantics<parallel>, #tpu.dimension_semantics<parallel>], iteration_bounds = array<i64: 2, 1>, scalar_prefetch = 0 : i64, scratch_operands = 0 : i64, tpu.core_type = #tpu.core_type<tc>, window_params = [{transform_indices = @transform_0, window_bounds = array<i64: 1, 32, 256>}, {transform_indices = @transform_1, window_bounds = array<i64: 1, 1, 256>}]} {
    %c0 = arith.constant 0 : index
    %c0_0 = arith.constant 0 : index
    %c0_1 = arith.constant 0 : index
    %0 = vector.load %arg2[%c0, %c0_0, %c0_1] : memref<1x32x256xf32, #tpu.memory_space<vmem>>, vector<1x32x256xf32>
    %cst = arith.constant dense<0.000000e+00> : vector<1x256xf32>
    %1 = vector.multi_reduction <add>, %0, %cst [1] : vector<1x32x256xf32> to vector<1x256xf32>
    %2 = vector.shape_cast %1 : vector<1x256xf32> to vector<1x1x256xf32>
    %cst_2 = arith.constant 3.125000e-02 : f32
    %3 = vector.broadcast %cst_2 : f32 to vector<1x1x256xf32>
    %4 = arith.mulf %2, %3 : vector<1x1x256xf32>
    %c0_3 = arith.constant 0 : index
    %c0_4 = arith.constant 0 : index
    %c0_5 = arith.constant 0 : index
    %5 = vector.load %arg3[%c0_3, %c0_4, %c0_5] : memref<1x1x256xf32, #tpu.memory_space<vmem>>, vector<1x1x256xf32>
    tpu.vector_store %arg3[%c0_3, %c0_4, %c0_5], %4 {strides = array<i32>} : memref<1x1x256xf32, #tpu.memory_space<vmem>>, vector<1x1x256xf32>,
    return
  }
  func.func @transform_0(%arg0: i32, %arg1: i32) -> (i32, i32, i32) {
    %c0_i32 = arith.constant 0 : i32
    %c0_i32_0 = arith.constant 0 : i32
    return %arg0, %c0_i32, %arg1 : i32, i32, i32
  }
  func.func @transform_1(%arg0: i32, %arg1: i32) -> (i32, i32, i32) {
    %c0_i32 = arith.constant 0 : i32
    %c0_i32_0 = arith.constant 0 : i32
    return %arg0, %c0_i32, %arg1 : i32, i32, i32
  }
}

</mosaic_0001>

<bundles_post_ra>
// kernel: tpu_custom_call.1
= control target key start
LH: loop header
LB: loop body
LE: loop exit
PB: predicated region body
PF: predicated region fallthrough
CT: control target
= control target key end

     0   :  { %6 = vsyncpa [#allocation3], 0  ;;  %s623_s0 = inlined_call_operand.hbm [shape: f32[2,32,256], index: 0, kind: input, shape index: {}]   ;;  %s624_s1 = inlined_call_operand.hbm [shape: f32[2,1,256], index: 1, kind: output, shape index: {}]  }
   0x1   :  { %8 = vsyncpa [#allocation3 + $0x1], 0 }
   0x2   :  { %9 = vsyncpa [#allocation4], 0 }
   0x3   :  { %11 = vsyncpa [#allocation4 + $0x1], 0  ;;  %s502_s6 = smov 0   ;;  %s504_s7 = smov 0  }
   0x4   :  { %s506_s8 = smov 0   ;;  %s508_s9 = smov 0  }
   0x5   :  { %s510_s10 = smov 0   ;;  %s512_s11 = smov 0  }
   0x6 LB: > { %s297_s12 = sadd.s32 4294967295, %s488_s11   ;;  %s298_s13 = sadd.s32 4294967294, %s488_s11   ;;  %s488_s11 = sphi %s512_s11, %s17_s11   ;;  %s484_s10 = sphi %s510_s10, %s633_s10   ;;  %s480_s9 = sphi %s508_s9, %s632_s9   ;;  %s476_s8 = sphi %s506_s8, %s631_s8   ;;  %s472_s7 = sphi %s504_s7, %s630_s7   ;;  %s468_s6 = sphi %s502_s6, %s629_s6  }
   0x7   : > { %s29_s14 = sadd.s32 1, %s484_s10  ;;  %s38_s15 = sadd.s32 1, %s476_s8 }
   0x8   : > { %p31_p0 = scmp.ge.s32.totalorder %s29_s14, 2  ;;  %p45_p1 = scmp.ne.s32.totalorder %s476_s8, %s472_s7 }
   0x9   : > { %p46_p2 = scmp.eq.s32.totalorder %s488_s11, 0  ;;  %p51_p3 = scmp.ne.s32.totalorder %s472_s7, %s468_s6 }
   0xa   : > { %s635_s14 = smov (%p31_p0, %s29_s14), 0  ;;  %p52_p5 = scmp.eq.s32.totalorder %s297_s12, 0 }
   0xb   : > { %p543_p4 = por %p46_p2, %p45_p1  ;;  %s33_s17 = ssub.s32 %s484_s10, %s635_s14 }
   0xc   : > { %p77_p6 = scmp.eq.s32.totalorder %s297_s12, 1  ;;  %p36_p7 = scmp.eq.s32.totalorder %s33_s17, 0 }
   0xd   : > { %p549_p8 = por %p52_p5, %p51_p3  ;;  %p83_p10 = scmp.eq.s32.totalorder %s298_s13, 1 }
   0xe   : > { %p553_p9 = por %p77_p6, %p45_p1  ;;  %p300_p12 = scmp.ge.s32.totalorder %s488_s11, 2 }
   0xf   : > { %s558_s20 = scalar_select %p36_p7, %s476_s8, %s38_s15  }
  0x10   : > { %p560_p11 = por %p83_p10, %p51_p3  ;;  %p324_p13 = scmp.lt.s32.totalorder %s488_s11, 2 }
  0x11   : > { %s103_s22 = sand.u32 1, %s476_s8   ;;  %s311_s24 = sshll.u32 %s484_s10, 6 }
  0x12   : > { %s301_s23 = sshll.u32 %s103_s22, 6  ;;  %s114_s27 = scalar_lea.hbm %s623_s0, %s311_s24 }
  0x13   : > { %s107_s28 = scalar_lea.vmem [#allocation2], %s301_s23  ;;  %s115_s30 = sshll.u32 %s114_s27, 4  ;;  %s116_s30 = int_to_ptr.hbm [resolvable:$true] %s115_s30 }
  0x14   : > { %s117_s29 = sshll.u32 %s107_s28, 4  ;;  %p317_p0 = pnand %p324_p13, %p543_p4  ;;  %s118_s29 = int_to_ptr.vmem [resolvable:$true] %s117_s29 }
  0x15   : > { %p304_p1 = scmp.ge.s32.totalorder %s488_s11, 1  ;;  %s104_s2 = scalar_lea.sflag [#allocation3], %s103_s22 }
  0x16   : > { %s490_s3 = smov 256   ;;  %s491_s4 = smov 16  }
  0x17   : > { %319 = dma.hbm_to_vmem [thread:$0]  (!%p317_p0), %s116_s30, 1024, %s118_s29, %s104_s2, %s490_s3, %s490_s3, %s491_s4  }
  0x18   : > { %p125_p2 = scmp.lt.s32.totalorder %s488_s11, 3 }
  0x1a   : > { %p126_p3 = pnand %p304_p1, %p125_p2 }
  0x1b   : > { %s576_s5 = sand.u32 (!%p126_p3), 1, %s472_s7  }
  0x1c   : > { %129 = sbr.rel (%p126_p3) target bundleno = 62 (0x3e), region = 24  ;;  %s305_s12 = sshll.u32 (!%p126_p3), %s576_s5, 6 }
  0x1d   : > { %s132_s13 = scalar_lea.sflag (!%p126_p3), [#allocation3], %s576_s5  ;;  %s135_s15 = scalar_lea.vmem (!%p126_p3), [#allocation2], %s305_s12 }
  0x21   : > { %459 = dma.done.wait (%p549_p8), %s132_s13, 1024  }
  0x22   : > { %461 = vsyncadd (%p549_p8), %s132_s13, 4294966272  ;;  %v157_v0 = vld [vmem:[%s135_s15] sm:$0xff]  ;;  %v158_v1 = vld [vmem:[%s135_s15 + $0x8] sm:$0xff]  ;;  %s306_s16 = sshll.u32 %s576_s5, 1  ;;  %s308_s17 = sshll.u32 %s480_s9, 1  ;;  %v191_v26 = vlaneseq  ;;  %vm188_vm0 = vcmask 1040384  }
  0x23   : > { %v159_v2 = vld [vmem:[%s135_s15 + $0x10] sm:$0xff]  ;;  %v160_v3 = vld [vmem:[%s135_s15 + $0x18] sm:$0xff]  ;;  %v161_v4 = vld [vmem:[%s135_s15 + $0x20] sm:$0xff]  ;;  %s209_s23 = scalar_lea.hbm %s624_s1, %s308_s17  ;;  %s154_s24 = scalar_lea.vmem [#allocation5], %s306_s16 }
  0x24   : > { %v162_v5 = vld [vmem:[%s135_s15 + $0x28] sm:$0xff]  ;;  %v165_v6 = vadd.f32 %v159_v2, %v157_v0  ;;  %v163_v7 = vld [vmem:[%s135_s15 + $0x30] sm:$0xff]  ;;  %v174_v8 = vadd.f32 %v160_v3, %v158_v1  ;;  %v164_v9 = vld [vmem:[%s135_s15 + $0x38] sm:$0xff]  ;;  %s211_s25 = sshll.u32 %s154_s24, 4  ;;  %s213_s26 = sshll.u32 %s209_s23, 4  ;;  %vm193_vm1 = vcmp.lt.s32.totalorder %v191_v26, 256  ;;  %s212_s25 = int_to_ptr.vmem [resolvable:$true] %s211_s25  ;;  %s214_s26 = int_to_ptr.hbm [resolvable:$true] %s213_s26 }
  0x25   : > { %s197_s9 = scalar_lea.sflag [#allocation4], %s576_s5  ;;  %s420_s27 = sshra.s32 %s214_s26, 4  ;;  %s421_s27 = int_to_ptr.hbm [resolvable:$true] %s420_s27 }
  0x26   : > { %v166_v10 = vadd.f32 %v165_v6, %v161_v4  ;;  %v175_v11 = vadd.f32 %v174_v8, %v162_v5  ;;  %s422_s28 = scalar_lea.hbm %s421_s27, 2  ;;  %s426_s2 = scalar_lea.hbm %s624_s1, 4 }
  0x27   : > { %p423_p4 = scmp.ne.s32.totalorder %s421_s27, %s422_s28  ;;  %p427_p7 = scmp.lt.s32.totalorder %s421_s27, %s624_s1 }
  0x28   : > { %v167_v12 = vadd.f32 %v166_v10, %v163_v7  ;;  %v176_v13 = vadd.f32 %v175_v11, %v164_v9  ;;  %p428_p8 = scmp.lt.s32.totalorder %s426_s2, %s422_s28 }
  0x29   : > { %p424_p5 = pnand %p423_p4, %p553_p9 }
  0x2a   : > { %v168_v14 = vrot.slane %v167_v12, 4  ;;  %v177_v15 = vrot.slane %v176_v13, 4  ;;  %p429_p10 = por %p428_p8, %p427_p7 }
  0x2b   : > { %p425_p6 = pneg %p424_p5 }
  0x2c   : > { %v169_v16 = vadd.f32 %v168_v14, %v167_v12  ;;  %v178_v17 = vadd.f32 %v177_v15, %v176_v13 }
  0x2d   : > { %p430_p13 = pnand %p429_p10, %p425_p6 }
  0x2e   : > { %v170_v18 = vrot.slane %v169_v16, 2  ;;  %v179_v19 = vrot.slane %v178_v17, 2 }
  0x30   : > { %v171_v20 = vadd.f32 %v170_v18, %v169_v16  ;;  %v180_v21 = vadd.f32 %v179_v19, %v178_v17 }
  0x32   : > { %v172_v22 = vrot.slane %v171_v20, 1  ;;  %v181_v23 = vrot.slane %v180_v21, 1 }
  0x34   : > { %v173_v24 = vadd.f32 %v172_v22, %v171_v20  ;;  %v182_v25 = vadd.f32 %v181_v23, %v180_v21 }
  0x36   : > { %v183_v27 = vmul.f32 0.03125, %v173_v24  ;;  %v184_v28 = vmul.f32 0.03125, %v182_v25 }
  0x38   : > { %v187_v29 = vrot.slane %v184_v28, 7 }
  0x3a   : > { %v189_v30 = vsel %vm188_vm0, %v183_v27, %v187_v29 }
  0x3b   : > { %195 = vst.msk [vmem:[%s154_s24] sm:$0x3] %vm193_vm1, %v189_v30 }
  0x3c   : > { %433 = shalt.err (!%p430_p13)
}
  0x3d   : > { %314 = dma.vmem_to_hbm [thread:$0]  (%p553_p9), %s212_s25, 32, %s214_s26, %s197_s9  }
  0x3e PF: > { %s225_s5 = sand.u32 1, %s468_s6   ;;  %p321_p0 = pnand %p300_p12, %p560_p11 }
  0x3f   : > { %s226_s12 = scalar_lea.sflag [#allocation4], %s225_s5 }
  0x40   : > { %p322_p1 = pneg %p321_p0 }
  0x42   : > { %463 = dma.done.wait (%p322_p1), %s226_s12, 32  }
  0x43   : > { %465 = vsyncadd (%p322_p1), %s226_s12, 4294967264  ;;  %s17_s11 = sadd.s32 1, %s488_s11   ;;  %s629_s6 = smov %s472_s7 }
  0x44   : > { %p14_p2 = scmp.ge.s32.totalorder %s17_s11, 4   ;;  %s630_s7 = smov %s476_s8 }
  0x45   : > { %s631_s8 = smov %s558_s20  ;;  %s632_s9 = smov %s484_s10 }
  0x46   : > { %s633_s10 = smov %s635_s14  ;;  %16 = sbr.rel (!%p14_p2) target bundleno = 6 (0x6), region = 69 }
  0x4b   :  { %232 = vsyncpa [#allocation3], 1 }
  0x4c   :  { %234 = vsyncpa [#allocation3 + $0x1], 1 }
  0x4d   :  { %235 = vsyncpa [#allocation4], 1 }
  0x4e   :  { %237 = vsyncpa [#allocation4 + $0x1], 1 }

</bundles_post_ra>
